<compile_context>
chip_gen: v5e
topology: v5e:2x2
jax: 0.10.0
libtpu: 0.0.40
codegen_flags: <defaults>
</compile_context>

<pallas_src>
import functools

import jax
import jax.numpy as jnp
from jax import lax
from jax.experimental import pallas as pl
from jax.experimental.pallas import tpu as pltpu


def _round_up(x, m):
    return ((x + m - 1) // m) * m


def _center_loss_kernel(x_ref, lbl_ref, c_ref, csq_ref, out_ref, *,
                        batch_size, block_b):
    """One (TB, D) batch tile per grid step; centers stay VMEM-resident."""
    i = pl.program_id(0)

    x = x_ref[...].astype(jnp.float32)         # (TB, D)
    centers = c_ref[...].astype(jnp.float32)   # (C, D) resident across grid
    labels = lbl_ref[...]                      # (TB, 1) int32
    c_sq = csq_ref[...]                        # (1, C) f32, hoisted ||c||^2

    tb = x.shape[0]
    num_classes = centers.shape[0]

    # ||x_b||^2 per row (D on the lane axis, reduce over lanes).
    x_sq = jnp.sum(x * x, axis=1, keepdims=True)            # (TB, 1)

    # MXU: inner products with every center, contracting D with D (no
    # in-kernel transpose), f32 accumulation.
    s = lax.dot_general(x, centers, (((1,), (1,)), ((), ())),
                        preferred_element_type=jnp.float32)  # (TB, C)

    distmat = x_sq + c_sq - 2.0 * s                          # (TB, C)

    # One-hot label mask (matches reference: distmat * mask, clamp after mask).
    class_ids = lax.broadcasted_iota(jnp.int32, (tb, num_classes), 1)
    onehot = labels == class_ids                             # (TB, C)
    masked = jnp.where(onehot, distmat, 0.0)
    clamped = jnp.clip(masked, 1e-12, 1e12)

    # Zero out padded batch rows so they contribute nothing to the sum.
    rows = lax.broadcasted_iota(jnp.int32, (tb, num_classes), 0) + i * block_b
    contrib = jnp.where(rows < batch_size, clamped, 0.0)

    partial = jnp.sum(jnp.sum(contrib, axis=1, keepdims=True),
                      axis=0, keepdims=True)                 # (1, 1)

    # Lane-dense output block: partial sum on lane 0, zeros elsewhere.
    lane = lax.broadcasted_iota(jnp.int32, (1, 128), 1)
    out_ref[...] = jnp.where(lane == 0, partial, 0.0)


@functools.partial(jax.jit, static_argnames=("tb",))
def center_loss(x, centers, labels, *, tb=256):
    """x: (B, D) float, centers: (C, D) float, labels: (B,) int -> scalar f32."""
    B, D = x.shape
    C, _ = centers.shape

    block_b = min(tb, _round_up(B, 8))
    b_pad = _round_up(B, block_b)
    nb = b_pad // block_b

    x_pad = jnp.zeros((b_pad, D), x.dtype).at[:B].set(x)
    labels_pad = jnp.zeros((b_pad, 1), jnp.int32).at[:B, 0].set(
        labels.astype(jnp.int32))

    # Hoisted ||c||^2 (computed once, tiny).
    c_sq = jnp.sum(centers.astype(jnp.float32) ** 2, axis=1,
                   keepdims=True).T                           # (1, C)

    kernel = functools.partial(_center_loss_kernel,
                               batch_size=B, block_b=block_b)

    # VMEM budget: resident centers + double-buffered x/label tiles + small bits.
    itemsize_x = jnp.dtype(x.dtype).itemsize
    itemsize_c = jnp.dtype(centers.dtype).itemsize
    needed = (2 * C * D * itemsize_c
              + 2 * block_b * D * itemsize_x
              + 2 * block_b * 4
              + 2 * C * 4
              + 2 * 128 * 4)
    vmem_limit = None
    if needed > 24 * 1024 * 1024:
        vmem_limit = min(needed + (16 << 20), 100 << 20)

    partials = pl.pallas_call(
        kernel,
        out_shape=jax.ShapeDtypeStruct((1, nb * 128), jnp.float32),
        grid_spec=pltpu.PrefetchScalarGridSpec(
            num_scalar_prefetch=0,
            grid=(nb,),
            in_specs=[
                # x tile for this batch block
                pl.BlockSpec((block_b, D), lambda i: (i, 0)),
                # labels for this batch block
                pl.BlockSpec((block_b, 1), lambda i: (i, 0)),
                # full centers table, resident across the whole grid
                pl.BlockSpec((C, D), lambda i: (0, 0)),
                # hoisted ||c||^2, resident across the whole grid
                pl.BlockSpec((1, C), lambda i: (0, 0)),
            ],
            out_specs=pl.BlockSpec((1, 128), lambda i: (0, i)),
        ),
        compiler_params=pltpu.CompilerParams(
            dimension_semantics=("parallel",),
            vmem_limit_bytes=vmem_limit,
        ),
    )(x_pad, labels_pad, centers, c_sq)

    return jnp.sum(partials) / jnp.float32(B)


def center_loss_reference(x, centers, labels):
    """Pure-JAX replica of the PyTorch forward (full distmat, clamp after mask)."""
    B = x.shape[0]
    C = centers.shape[0]
    distmat = (
        jnp.sum(x * x, axis=1, keepdims=True)
        + jnp.sum(centers * centers, axis=1)[None, :]
        - 2.0 * x @ centers.T
    )
    mask = (labels[:, None] == jnp.arange(C)[None, :]).astype(jnp.float32)
    dist = jnp.clip(distmat * mask, 1e-12, 1e12)
    return jnp.sum(dist) / B


if __name__ == "__main__":
    # Small shapes consistent with the module's forward
    # (batch=40, feature_dim=32, num_classes=24); tb=16 so the demo exercises
    # multiple grid blocks plus a padded final block.
    B, D, C = 40, 32, 24

    key = jax.random.PRNGKey(0)
    kx, kc, kl = jax.random.split(key, 3)

    x = jax.random.normal(kx, (B, D), dtype=jnp.float32)
    # Deterministic synthetic init of the `centers` parameter (torch.randn analogue).
    centers = jax.random.normal(kc, (C, D), dtype=jnp.float32)
    labels = jax.random.randint(kl, (B,), 0, C, dtype=jnp.int32)

    loss = center_loss(x, centers, labels, tb=16)
    jax.block_until_ready(loss)

    ref = center_loss_reference(x, centers, labels)
    assert jnp.allclose(loss, ref, rtol=1e-5, atol=1e-5), (loss, ref)

    print("KERNEL_OK")
</pallas_src>

<mosaic_0001>
module attributes {stable_mosaic.version = 11 : i64} {
  func.func @_center_loss_kernel(%arg0: i32, %arg1: memref<16x32xf32, #tpu.memory_space<vmem>>, %arg2: memref<16x1xi32, #tpu.memory_space<vmem>>, %arg3: memref<24x32xf32, #tpu.memory_space<vmem>>, %arg4: memref<1x24xf32, #tpu.memory_space<vmem>>, %arg5: memref<1x128xf32, #tpu.memory_space<vmem>>) attributes {dimension_semantics = [#tpu.dimension_semantics<parallel>], iteration_bounds = array<i64: 3>, scalar_prefetch = 0 : i64, scratch_operands = 0 : i64, tpu.core_type = #tpu.core_type<tc>, window_params = [{transform_indices = @transform_0, window_bounds = array<i64: 16, 32>}, {transform_indices = @transform_1, window_bounds = array<i64: 16, 1>}, {pipeline_mode = #tpu.pipeline_mode<synchronous>, transform_indices = @transform_2, window_bounds = array<i64: 24, 32>}, {pipeline_mode = #tpu.pipeline_mode<synchronous>, transform_indices = @transform_3, window_bounds = array<i64: 1, 24>}, {transform_indices = @transform_4, window_bounds = array<i64: 1, 128>}]} {
    %c0 = arith.constant 0 : index
    %c0_0 = arith.constant 0 : index
    %0 = vector.load %arg1[%c0, %c0_0] : memref<16x32xf32, #tpu.memory_space<vmem>>, vector<16x32xf32>
    %c0_1 = arith.constant 0 : index
    %c0_2 = arith.constant 0 : index
    %1 = vector.load %arg3[%c0_1, %c0_2] : memref<24x32xf32, #tpu.memory_space<vmem>>, vector<24x32xf32>
    %c0_3 = arith.constant 0 : index
    %c0_4 = arith.constant 0 : index
    %2 = vector.load %arg2[%c0_3, %c0_4] : memref<16x1xi32, #tpu.memory_space<vmem>>, vector<16x1xi32>
    %c0_5 = arith.constant 0 : index
    %c0_6 = arith.constant 0 : index
    %3 = vector.load %arg4[%c0_5, %c0_6] : memref<1x24xf32, #tpu.memory_space<vmem>>, vector<1x24xf32>
    %4 = arith.mulf %0, %0 : vector<16x32xf32>
    %cst = arith.constant dense<0.000000e+00> : vector<16xf32>
    %5 = vector.multi_reduction <add>, %4, %cst [1] : vector<16x32xf32> to vector<16xf32>
    %6 = vector.shape_cast %5 : vector<16xf32> to vector<16x1xf32>
    %cst_7 = arith.constant dense<0.000000e+00> : vector<16x24xf32>
    %7 = tpu.matmul %0, %1, %cst_7 {dimension_numbers = #tpu.dot_dimension_numbers<[1], [1], [0], [0], [0, 0, 1, 0], [], []>} : vector<16x32xf32>, vector<24x32xf32>, vector<16x24xf32> -> vector<16x24xf32>
    %8 = vector.broadcast %6 : vector<16x1xf32> to vector<16x24xf32>
    %9 = vector.broadcast %3 : vector<1x24xf32> to vector<16x24xf32>
    %10 = arith.addf %8, %9 : vector<16x24xf32>
    %cst_8 = arith.constant 2.000000e+00 : f32
    %11 = vector.broadcast %cst_8 : f32 to vector<16x24xf32>
    %12 = arith.mulf %11, %7 : vector<16x24xf32>
    %13 = arith.subf %10, %12 : vector<16x24xf32>
    %14 = tpu.iota {dimensions = array<i32: 1>} : vector<16x24xi32>
    %15 = vector.broadcast %2 : vector<16x1xi32> to vector<16x24xi32>
    %16 = arith.cmpi eq, %15, %14 : vector<16x24xi32>
    %cst_9 = arith.constant 0.000000e+00 : f32
    %17 = vector.broadcast %cst_9 : f32 to vector<16x24xf32>
    %18 = arith.select %16, %13, %17 : vector<16x24xi1>, vector<16x24xf32>
    %cst_10 = arith.constant 9.99999996E-13 : f32
    %cst_11 = arith.constant 9.99999995E+11 : f32
    %19 = vector.broadcast %cst_10 : f32 to vector<16x24xf32>
    %20 = arith.maximumf %19, %18 : vector<16x24xf32>
    %21 = vector.broadcast %cst_11 : f32 to vector<16x24xf32>
    %22 = arith.minimumf %21, %20 : vector<16x24xf32>
    %23 = tpu.iota {dimensions = array<i32: 0>} : vector<16x24xi32>
    %c16_i32 = arith.constant 16 : i32
    %24 = arith.muli %arg0, %c16_i32 : i32
    %25 = vector.broadcast %24 : i32 to vector<16x24xi32>
    %26 = arith.addi %23, %25 : vector<16x24xi32>
    %c40_i32 = arith.constant 40 : i32
    %27 = vector.broadcast %c40_i32 : i32 to vector<16x24xi32>
    %28 = arith.cmpi slt, %26, %27 : vector<16x24xi32>
    %cst_12 = arith.constant 0.000000e+00 : f32
    %29 = vector.broadcast %cst_12 : f32 to vector<16x24xf32>
    %30 = arith.select %28, %22, %29 : vector<16x24xi1>, vector<16x24xf32>
    %cst_13 = arith.constant dense<0.000000e+00> : vector<16xf32>
    %31 = vector.multi_reduction <add>, %30, %cst_13 [1] : vector<16x24xf32> to vector<16xf32>
    %32 = vector.shape_cast %31 : vector<16xf32> to vector<16x1xf32>
    %cst_14 = arith.constant dense<0.000000e+00> : vector<1xf32>
    %33 = vector.multi_reduction <add>, %32, %cst_14 [0] : vector<16x1xf32> to vector<1xf32>
    %34 = vector.shape_cast %33 : vector<1xf32> to vector<1x1xf32>
    %35 = tpu.iota {dimensions = array<i32: 1>} : vector<1x128xi32>
    %c0_i32 = arith.constant 0 : i32
    %36 = vector.broadcast %c0_i32 : i32 to vector<1x128xi32>
    %37 = arith.cmpi eq, %35, %36 : vector<1x128xi32>
    %cst_15 = arith.constant 0.000000e+00 : f32
    %38 = vector.shape_cast %34 : vector<1x1xf32> to vector<1x1xf32>
    %39 = vector.broadcast %38 : vector<1x1xf32> to vector<1x128xf32>
    %40 = vector.broadcast %cst_15 : f32 to vector<1x128xf32>
    %41 = arith.select %37, %39, %40 : vector<1x128xi1>, vector<1x128xf32>
    %c0_16 = arith.constant 0 : index
    %c0_17 = arith.constant 0 : index
    %42 = vector.load %arg5[%c0_16, %c0_17] : memref<1x128xf32, #tpu.memory_space<vmem>>, vector<1x128xf32>
    tpu.vector_store %arg5[%c0_16, %c0_17], %41 {strides = array<i32>} : memref<1x128xf32, #tpu.memory_space<vmem>>, vector<1x128xf32>,
    return
  }
  func.func @transform_0(%arg0: i32) -> (i32, i32) {
    %c0_i32 = arith.constant 0 : i32
    %c0_i32_0 = arith.constant 0 : i32
    return %arg0, %c0_i32 : i32, i32
  }
  func.func @transform_1(%arg0: i32) -> (i32, i32) {
    %c0_i32 = arith.constant 0 : i32
    %c0_i32_0 = arith.constant 0 : i32
    return %arg0, %c0_i32 : i32, i32
  }
  func.func @transform_2(%arg0: i32) -> (i32, i32) {
    %c0_i32 = arith.constant 0 : i32
    %c0_i32_0 = arith.constant 0 : i32
    %c0_i32_1 = arith.constant 0 : i32
    return %c0_i32, %c0_i32_0 : i32, i32
  }
  func.func @transform_3(%arg0: i32) -> (i32, i32) {
    %c0_i32 = arith.constant 0 : i32
    %c0_i32_0 = arith.constant 0 : i32
    %c0_i32_1 = arith.constant 0 : i32
    return %c0_i32, %c0_i32_0 : i32, i32
  }
  func.func @transform_4(%arg0: i32) -> (i32, i32) {
    %c0_i32 = arith.constant 0 : i32
    %c0_i32_0 = arith.constant 0 : i32
    return %c0_i32, %arg0 : i32, i32
  }
}

</mosaic_0001>

<bundles_post_ra>
// kernel: center_loss.1
= control target key start
LH: loop header
LB: loop body
LE: loop exit
PB: predicated region body
PF: predicated region fallthrough
CT: control target
= control target key end

     0   :  { %s451_s15 = smov 0   ;;  %s499_s0 = inlined_call_operand.vmem [shape: f32[48,32], index: 0, kind: input, shape index: {}]   ;;  %s500_s1 = inlined_call_operand.vmem [shape: s32[48,1], index: 1, kind: input, shape index: {}]   ;;  %s501_s2 = inlined_call_operand.vmem [shape: f32[24,32], index: 2, kind: input, shape index: {}]   ;;  %s502_s3 = inlined_call_operand.vmem [shape: f32[1,24], index: 3, kind: input, shape index: {}]   ;;  %s503_s4 = inlined_call_operand.vmem [shape: f32[1,384], index: 4, kind: output, shape index: {}]  }
   0x1 LB: > { %s457_s16 = sadd.s32 4294967295, %s423_s15   ;;  %p389_p0 = scmp.ge.s32.totalorder %s423_s15, 1  ;;  %s423_s15 = sphi %s451_s15, %s14_s15  }
   0x2   : > { %p174_p1 = scmp.lt.s32.totalorder %s423_s15, 4 }
   0x4   : > { %p175_p2 = pnand %p389_p0, %p174_p1 }
   0x5   : > { %s390_s19 = sshll.u32 (!%p175_p2), %s457_s16, 1  ;;  %s399_s7 = sshll.u32 (!%p175_p2), %s457_s16, 4 }
   0x6   : > { %178 = sbr.rel (%p175_p2) target bundleno = 300 (0x12c), region = 36  ;;  %p204_p3 = scmp.lt.s32.totalorder (!%p175_p2), %s390_s19, 5 }
   0x7   : > { %p215_p4 = scmp.lt.s32.totalorder (!%p175_p2), %s457_s16, 2 }
   0xb   : > { %v222_v0 = vld [vmem:[%s501_s2 + $0x10] sm:$0xff]  ;;  %vm228_vm0 = vcmask 261120   ;;  %v221_v1 = vld [vmem:[%s501_s2 + $0x8] sm:$0xff]  ;;  %v425_v2 = vmov 0   ;;  %s505_s19 = smov (!%p204_p3, %s390_s19), 5  ;;  %v220_v3 = vld [vmem:[%s501_s2] sm:$0xff]  ;;  %v282_v14 = vlaneseq  ;;  %v302_v23 = vstv %s399_s7 }
   0xc   : > { %394 = vmatpush.xpose.msk.msra.mxu0 %vm228_vm0, %v222_v0  ;;  %402 = vmatpush.xpose.msk.msra.mxu1 %vm228_vm0, %v222_v0  ;;  %s391_s22 = sshll.u32 %s505_s19, 3  ;;  %v416_v15 = vld [vmem:[%s502_s3] ss:$0 sm:$0xff]  ;;  %vm309_vm4 = vcmask 195584   ;;  %s507_s16 = smov (!%p215_p4, %s457_s16), 2 }
   0xd   : > { %414 = vset.pattern.permute.xlu1 %v425_v2  ;;  %415 = vset.pattern.permute.xlu0 %v425_v2  ;;  %s207_s27 = scalar_lea.vmem %s499_s0, %s391_s22  ;;  %s213_s30 = scalar_lea.vmem %s500_s1, %s391_s22  ;;  %v283_v17 = vand.u32 127, %v282_v14  ;;  %v299_v26 = vshrl.u32 %v282_v14, 7 }
   0xe   : > { %v218_v4 = vld [vmem:[%s207_s27] sm:$0xff]  ;;  %v219_v7 = vld [vmem:[%s207_s27 + $0x8] sm:$0xff]  ;;  %s217_s10 = scalar_lea.vmem %s503_s4, %s507_s16 }
   0xf   : > { %v223_v5 = vld [vmem:[%s213_s30] sm:$0xff]  ;;  %v226_v6 = vmul.f32 %v218_v4, %v218_v4  ;;  %v227_v9 = vmul.f32 %v219_v7, %v219_v7  ;;  %v224_v10 = vld [vmem:[%s213_s30 + $0x8] sm:$0xff]  ;;  %v303_v29 = vadd.s32 %v302_v23, %v299_v26  ;;  %v300_v32 = vadd.s32 8, %v299_v26 }
  0x10   : > { %395 = vmatpush.xpose.msk.msra.mxu0 %vm228_vm0, %v221_v1  ;;  %403 = vmatpush.xpose.msk.msra.mxu1 %vm228_vm0, %v221_v1  ;;  %vm323_vm6 = vcmp.eq.s32.totalorder %v283_v17, 0 }
  0x11   : > { %285 = vperm.xlu1 %414, %v223_v5   ;;  %v229_v8 = vsel %vm228_vm0, %v226_v6, 0.0  ;;  %v232_v11 = vsel %vm228_vm0, %v227_v9, 0.0  ;;  %vm305_vm3 = vcmp.lt.s32.totalorder %v303_v29, 40  ;;  %v304_v36 = vadd.s32 %v302_v23, %v300_v32 }
  0x12   : > { %230 = vadd.xlane.f32.xlu0 %v229_v8 }
  0x13   : > { %vm306_vm5 = vcmp.lt.s32.totalorder %v304_v36, 40 }
  0x14   : > { %396 = vmatpush.xpose.msk.msra.mxu0 %vm228_vm0, %v220_v3  ;;  %404 = vmatpush.xpose.msk.msra.mxu1 %vm228_vm0, %v220_v3 }
  0x17   : > { %397 = vmatmul.msk.f32.vlgmr.msra.gmra.mxu0 %vm228_vm0, %v218_v4  ;;  %398 = vmatmul.msk.f32.vlgmr.msra.gmra.mxu1 %vm228_vm0, %v219_v7 }
  0x19   : > { %288 = vperm.xlu1 %414, %v224_v10  }
  0x1a   : > { %233 = vadd.xlane.f32.xlu0 %v232_v11 }
  0x83   : > { %v286_v13 = vpop.permute.xlu1 %285 }
  0x84   : > { %vm290_vm1 = vcmp.eq.s32.totalorder %v286_v13, %v283_v17 }
  0x85   : > { %v231_v12 = vpop.xlane.xlu0 %230 }
  0x86   : > { %v276_v18 = vadd.f32 %v416_v15, %v231_v12 }
  0x8b   : > { %v289_v20 = vpop.permute.xlu1 %288 }
  0x8c   : > { %vm291_vm2 = vcmp.eq.s32.totalorder %v289_v20, %v283_v17 }
  0x8d   : > { %v234_v16 = vpop.xlane.xlu0 %233 }
  0x8e   : > { %v277_v19 = vadd.f32 %v416_v15, %v234_v16 }
  0x94   : > { %v267_v21 = vpop.f32.mrf.mxu0  ;;  %v270_v22 = vpop.f32.mrf.mxu1 }
  0x95   : > { %v278_v24 = vmul.f32 2.0, %v267_v21  ;;  %v279_v25 = vmul.f32 2.0, %v270_v22 }
  0x97   : > { %v280_v27 = vsub.f32 %v276_v18, %v278_v24  ;;  %v281_v28 = vsub.f32 %v277_v19, %v279_v25 }
  0x99   : > { %v293_v30 = vsel %vm291_vm2, %v281_v28, 0.0  ;;  %v292_v31 = vsel %vm290_vm1, %v280_v27, 0.0 }
  0x9a   : > { %v294_v33 = vmax.f32 %v292_v31, 1e-12  ;;  %v295_v34 = vmax.f32 %v293_v30, 1e-12 }
  0x9c   : > { %v296_v35 = vmin.f32 %v294_v33, 1e+12  ;;  %v297_v39 = vmin.f32 %v295_v34, 1e+12 }
  0x9e   : > { %v307_v37 = vsel %vm305_vm3, %v296_v35, 0.0  ;;  %v308_v40 = vsel %vm306_vm5, %v297_v39, 0.0 }
  0x9f   : > { %v310_v38 = vsel %vm309_vm4, %v307_v37, 0.0  ;;  %v313_v41 = vsel %vm309_vm4, %v308_v40, 0.0 }
  0xa0   : > { %311 = vadd.xlane.f32.xlu2 %v310_v38 }
  0xa8   : > { %314 = vadd.xlane.f32.xlu2 %v313_v41 }
 0x113   : > { %v312_v42 = vpop.xlane.xlu2 %311 }
 0x11b   : > { %v315_v43 = vpop.xlane.xlu2 %314 }
 0x11c   : > { %v316_v44 = vadd.f32 %v315_v43, %v312_v42 }
 0x11e   : > { %v317_v45 = vrot.slane %v316_v44, 4 }
 0x120   : > { %v318_v46 = vadd.f32 %v317_v45, %v316_v44 }
 0x122   : > { %v319_v47 = vrot.slane %v318_v46, 2 }
 0x124   : > { %v320_v48 = vadd.f32 %v319_v47, %v318_v46 }
 0x126   : > { %v321_v49 = vrot.slane %v320_v48, 1 }
 0x128   : > { %v322_v50 = vadd.f32 %v321_v49, %v320_v48 }
 0x12a   : > { %v324_v51 = vsel %vm323_vm6, %v322_v50, 0.0 }
 0x12b   : > { %325 = vst [vmem:[%s217_s10] sm:$0x1] %v324_v51 }
 0x12c PF: > { %s14_s15 = sadd.s32 1, %s423_s15  }
 0x12d   : > { %p11_p5 = scmp.ge.s32.totalorder %s14_s15, 5  }
 0x12f   :  { %13 = sbr.rel (!%p11_p5) target bundleno = 1 (0x1), region = 69 }

</bundles_post_ra>
